<compile_context>
chip_gen: v7x
topology: tpu7x:2x2x1
jax: 0.10.0
libtpu: 0.0.40
codegen_flags: <defaults>
</compile_context>

<pallas_src>
import jax
import jax.numpy as jnp
from jax import lax
from jax.experimental import pallas as pl
from jax.experimental.pallas import tpu as pltpu

NUM_HEADS = 4
LN_EPS = 1e-5


def knowledge_integration_kernel(x_ref, wqk_ref, ones_ref, vwo_ref, whh_ref,
                                 bqk_ref, brow_ref, out_ref):
    x = x_ref[...]                       # (N, H)   N = B*S rows
    bo = brow_ref[0]                     # (1, H)
    bg1 = brow_ref[1]                    # (1, H)
    bp = brow_ref[2]                     # (1, H)
    gamma = brow_ref[3]                  # (1, H)
    beta = brow_ref[4]                   # (1, H)
    wg2_row = brow_ref[5]                # (1, H)  gate second layer as a row
    bg2 = brow_ref[6][:, :1]             # (1, 1)

    # ---- attention: Q-projection, scale and K^T folded into one slab ----
    s = jnp.dot(x, wqk_ref[...], preferred_element_type=jnp.float32) + bqk_ref[...]   # (N, NH*R)
    m = jnp.max(s, axis=-1, keepdims=True)      # row-global max: valid shift per head
    e = jnp.exp(s - m)
    # Per-head softmax denominator, broadcast back to lanes, in one MXU op.
    d = jnp.dot(e, ones_ref[...], preferred_element_type=jnp.float32)                 # (N, NH*R)
    p = e / d                                                                          # exact softmax
    # Context and attention out-projection folded into one slab.
    ko = jnp.dot(p, vwo_ref[...], preferred_element_type=jnp.float32) + bo            # (N, H)

    # ---- knowledge gate: Linear(2H->H) -> ReLU -> Linear(H->1) -> Sigmoid ----
    h1 = (jnp.dot(x, whh_ref[0], preferred_element_type=jnp.float32)
          + jnp.dot(ko, whh_ref[1], preferred_element_type=jnp.float32) + bg1)
    h1 = jnp.maximum(h1, 0.0)
    g = jax.nn.sigmoid(jnp.sum(h1 * wg2_row, axis=-1, keepdims=True) + bg2)           # (N, 1)

    # ---- residual gate combine + output projection + fused-stat layer norm ----
    out = x + g * ko
    out = jnp.dot(out, whh_ref[2], preferred_element_type=jnp.float32) + bp
    mu = jnp.mean(out, axis=-1, keepdims=True)
    ex2 = jnp.mean(out * out, axis=-1, keepdims=True)
    var = ex2 - mu * mu
    out_ref[...] = (out - mu) * lax.rsqrt(var + LN_EPS) * gamma + beta


def prepare_params(p):
    """One-time packing of frozen eval params into lane-dense kernel slabs."""
    f32 = jnp.float32
    H = p["wq"].shape[0]
    R = p["knowledge_bank"].shape[0]
    hd = H // NUM_HEADS
    scale = 1.0 / (hd ** 0.5)

    kb = p["knowledge_bank"].astype(f32)
    # Batch-invariant K/V projections hoisted out of the kernel.
    # Key bias dropped: it is constant across keys and cancels under softmax.
    k = kb @ p["wk"].astype(f32)                          # (R, H)
    v = kb @ p["wv"].astype(f32) + p["bv"].astype(f32)    # (R, H)

    wq_s = p["wq"].astype(f32) * scale                    # softmax scale folded in
    bq_s = p["bq"].astype(f32) * scale

    kh = k.reshape(R, NUM_HEADS, hd)
    vh = v.reshape(R, NUM_HEADS, hd)

    # scores[:, h*R:(h+1)*R] = x @ Wq_s[:, head h] @ K_h^T  -> fold into (H, NH*R)
    wqk = jnp.einsum("ind,rnd->inr",
                     wq_s.reshape(H, NUM_HEADS, hd), kh).reshape(H, NUM_HEADS * R)
    bqk = jnp.einsum("nd,rnd->nr",
                     bq_s.reshape(NUM_HEADS, hd), kh).reshape(1, NUM_HEADS * R)

    # ko = P @ (V_blockplaced @ Wo) + bo  -> fold into (NH*R, H)
    wo_h = p["wo"].astype(f32).reshape(NUM_HEADS, hd, H)
    vwo = jnp.einsum("rnd,nde->nre", vh, wo_h).reshape(NUM_HEADS * R, H)

    # Block-diagonal ones: per-head softmax sum broadcast back to lanes.
    ones_blk = jnp.kron(jnp.eye(NUM_HEADS, dtype=f32), jnp.ones((R, R), f32))

    whh = jnp.stack([p["wg1"][:H], p["wg1"][H:], p["wp"]], axis=0).astype(f32)   # (3, H, H)
    brow = jnp.stack([p["bo"], p["bg1"], p["bp"], p["gamma"], p["beta"],
                      p["wg2"].T, jnp.broadcast_to(p["bg2"], (1, H))],
                     axis=0).astype(f32)                                         # (7, 1, H)
    return {"wqk": wqk, "bqk": bqk, "ones_blk": ones_blk, "vwo": vwo,
            "whh": whh, "brow": brow}


@jax.jit
def knowledge_integration(x, packed):
    B, S, H = x.shape
    N = B * S
    NR = packed["ones_blk"].shape[0]
    x2d = x.reshape(N, H).astype(jnp.float32)

    # Advisory cost estimate for the XLA scheduler.
    flops = int(2 * N * (H * NR + NR * NR + NR * H + 3 * H * H))
    transcendentals = int(N * (NR + 2))
    bytes_accessed = int(4 * (x2d.size + packed["wqk"].size + packed["bqk"].size
                              + packed["ones_blk"].size + packed["vwo"].size
                              + packed["whh"].size + packed["brow"].size + N * H))

    vmem = pl.BlockSpec(memory_space=pltpu.MemorySpace.VMEM)
    out2d = pl.pallas_call(
        knowledge_integration_kernel,
        out_shape=jax.ShapeDtypeStruct((N, H), jnp.float32),
        in_specs=[vmem] * 7,
        out_specs=vmem,
        cost_estimate=pl.CostEstimate(flops=flops,
                                      transcendentals=transcendentals,
                                      bytes_accessed=bytes_accessed),
    )(x2d, packed["wqk"], packed["ones_blk"], packed["vwo"],
      packed["whh"], packed["bqk"], packed["brow"])

    return out2d.reshape(B, S, H)


def reference(x, p):
    """Pure-JAX reference of the same eval-mode forward pass."""
    B, S, H = x.shape
    hd = H // NUM_HEADS
    scale = 1.0 / (hd ** 0.5)
    kb = p["knowledge_bank"]                            # (R, H)

    q = x @ p["wq"] + p["bq"]                           # (B, S, H)
    k = kb @ p["wk"] + p["bk"]                          # (R, H)
    v = kb @ p["wv"] + p["bv"]                          # (R, H)

    qh = q.reshape(B, S, NUM_HEADS, hd)
    kh = k.reshape(-1, NUM_HEADS, hd)
    vh = v.reshape(-1, NUM_HEADS, hd)
    scores = jnp.einsum("bsnd,rnd->bnsr", qh, kh) * scale
    probs = jax.nn.softmax(scores, axis=-1)
    attn = jnp.einsum("bnsr,rnd->bsnd", probs, vh).reshape(B, S, H)
    ko = attn @ p["wo"] + p["bo"]

    cat = jnp.concatenate([x, ko], axis=-1)
    h1 = jax.nn.relu(cat @ p["wg1"] + p["bg1"])
    g = jax.nn.sigmoid(h1 @ p["wg2"] + p["bg2"])

    out = x + g * ko
    out = out @ p["wp"] + p["bp"]
    mu = out.mean(-1, keepdims=True)
    var = ((out - mu) ** 2).mean(-1, keepdims=True)
    return (out - mu) * jax.lax.rsqrt(var + LN_EPS) * p["gamma"] + p["beta"]


def init_params(key, hidden, num_rules):
    ks = jax.random.split(key, 12)
    s = 1.0 / jnp.sqrt(hidden).astype(jnp.float32)
    f32 = jnp.float32
    return {
        "knowledge_bank": jax.random.normal(ks[0], (num_rules, hidden), f32),
        "wq": jax.random.normal(ks[1], (hidden, hidden), f32) * s,
        "bq": jnp.zeros((1, hidden), f32),
        "wk": jax.random.normal(ks[2], (hidden, hidden), f32) * s,
        "bk": jnp.zeros((1, hidden), f32),
        "wv": jax.random.normal(ks[3], (hidden, hidden), f32) * s,
        "bv": jnp.zeros((1, hidden), f32),
        "wo": jax.random.normal(ks[4], (hidden, hidden), f32) * s,
        "bo": jax.random.normal(ks[5], (1, hidden), f32) * 0.01,
        "wg1": jax.random.normal(ks[6], (2 * hidden, hidden), f32) * s,
        "bg1": jnp.zeros((1, hidden), f32),
        "wg2": jax.random.normal(ks[7], (hidden, 1), f32) * s,
        "bg2": jnp.zeros((1, 1), f32),
        "wp": jax.random.normal(ks[8], (hidden, hidden), f32) * s,
        "bp": jax.random.normal(ks[9], (1, hidden), f32) * 0.01,
        "gamma": jnp.ones((1, hidden), f32),
        "beta": jnp.zeros((1, hidden), f32),
    }


if __name__ == "__main__":
    B, S, H, R = 2, 8, 32, 16          # batch, seq, hidden_size, num_knowledge_rules
    key = jax.random.PRNGKey(0)
    kx, kp = jax.random.split(key)
    x = jax.random.normal(kx, (B, S, H), jnp.float32)
    params = init_params(kp, H, R)

    # One-time packing / K,V hoisting (outside the per-call hot path).
    packed = prepare_params(params)
    packed = jax.tree_util.tree_map(jax.block_until_ready, packed)

    out = knowledge_integration(x, packed)
    out = jax.block_until_ready(out)

    ref = reference(x, params)
    assert out.shape == (B, S, H)
    # Kernel softmax uses exact division; remaining tolerance covers MXU f32
    # pass differences and the (exact-in-real-arithmetic) weight-folding
    # reassociation vs. the two-step reference.
    max_err = float(jnp.max(jnp.abs(out - ref)))
    assert jnp.allclose(out, ref, atol=1e-3, rtol=1e-3), f"mismatch vs reference, max err {max_err}"
    print("KERNEL_OK")
</pallas_src>

<mosaic_0001>
module attributes {stable_mosaic.version = 11 : i64} {
  func.func @knowledge_integration_kernel(%arg0: memref<16x32xf32, #tpu.memory_space<vmem>>, %arg1: memref<32x64xf32, #tpu.memory_space<vmem>>, %arg2: memref<64x64xf32, #tpu.memory_space<vmem>>, %arg3: memref<64x32xf32, #tpu.memory_space<vmem>>, %arg4: memref<3x32x32xf32, #tpu.memory_space<vmem>>, %arg5: memref<1x64xf32, #tpu.memory_space<vmem>>, %arg6: memref<7x1x32xf32, #tpu.memory_space<vmem>>, %arg7: memref<16x32xf32, #tpu.memory_space<vmem>>) attributes {dimension_semantics = [], scalar_prefetch = 0 : i64, scratch_operands = 0 : i64, tpu.core_type = #tpu.core_type<tc>} {
    %c0 = arith.constant 0 : index
    %c0_0 = arith.constant 0 : index
    %0 = vector.load %arg0[%c0, %c0_0] : memref<16x32xf32, #tpu.memory_space<vmem>>, vector<16x32xf32>
    %c0_1 = arith.constant 0 : index
    %c0_2 = arith.constant 0 : index
    %c0_3 = arith.constant 0 : index
    %1 = vector.load %arg6[%c0_1, %c0_2, %c0_3] : memref<7x1x32xf32, #tpu.memory_space<vmem>>, vector<1x1x32xf32>
    %2 = vector.shape_cast %1 : vector<1x1x32xf32> to vector<1x32xf32>
    %c1 = arith.constant 1 : index
    %c0_4 = arith.constant 0 : index
    %c0_5 = arith.constant 0 : index
    %3 = vector.load %arg6[%c1, %c0_4, %c0_5] : memref<7x1x32xf32, #tpu.memory_space<vmem>>, vector<1x1x32xf32>
    %4 = vector.shape_cast %3 : vector<1x1x32xf32> to vector<1x32xf32>
    %c2 = arith.constant 2 : index
    %c0_6 = arith.constant 0 : index
    %c0_7 = arith.constant 0 : index
    %5 = vector.load %arg6[%c2, %c0_6, %c0_7] : memref<7x1x32xf32, #tpu.memory_space<vmem>>, vector<1x1x32xf32>
    %6 = vector.shape_cast %5 : vector<1x1x32xf32> to vector<1x32xf32>
    %c3 = arith.constant 3 : index
    %c0_8 = arith.constant 0 : index
    %c0_9 = arith.constant 0 : index
    %7 = vector.load %arg6[%c3, %c0_8, %c0_9] : memref<7x1x32xf32, #tpu.memory_space<vmem>>, vector<1x1x32xf32>
    %8 = vector.shape_cast %7 : vector<1x1x32xf32> to vector<1x32xf32>
    %c4 = arith.constant 4 : index
    %c0_10 = arith.constant 0 : index
    %c0_11 = arith.constant 0 : index
    %9 = vector.load %arg6[%c4, %c0_10, %c0_11] : memref<7x1x32xf32, #tpu.memory_space<vmem>>, vector<1x1x32xf32>
    %10 = vector.shape_cast %9 : vector<1x1x32xf32> to vector<1x32xf32>
    %c5 = arith.constant 5 : index
    %c0_12 = arith.constant 0 : index
    %c0_13 = arith.constant 0 : index
    %11 = vector.load %arg6[%c5, %c0_12, %c0_13] : memref<7x1x32xf32, #tpu.memory_space<vmem>>, vector<1x1x32xf32>
    %12 = vector.shape_cast %11 : vector<1x1x32xf32> to vector<1x32xf32>
    %c6 = arith.constant 6 : index
    %c0_14 = arith.constant 0 : index
    %c0_15 = arith.constant 0 : index
    %13 = vector.load %arg6[%c6, %c0_14, %c0_15] : memref<7x1x32xf32, #tpu.memory_space<vmem>>, vector<1x1x32xf32>
    %14 = vector.shape_cast %13 : vector<1x1x32xf32> to vector<1x32xf32>
    %15 = vector.extract_strided_slice %14 {offsets = [0, 0], sizes = [1, 1], strides = [1, 1]} : vector<1x32xf32> to vector<1x1xf32>
    %c0_16 = arith.constant 0 : index
    %c0_17 = arith.constant 0 : index
    %16 = vector.load %arg1[%c0_16, %c0_17] : memref<32x64xf32, #tpu.memory_space<vmem>>, vector<32x64xf32>
    %cst = arith.constant dense<0.000000e+00> : vector<16x64xf32>
    %17 = tpu.matmul %0, %16, %cst {dimension_numbers = #tpu.dot_dimension_numbers<[1], [0], [0], [1], [0, 0, 1, 1], [], []>} : vector<16x32xf32>, vector<32x64xf32>, vector<16x64xf32> -> vector<16x64xf32>
    %c0_18 = arith.constant 0 : index
    %c0_19 = arith.constant 0 : index
    %18 = vector.load %arg5[%c0_18, %c0_19] : memref<1x64xf32, #tpu.memory_space<vmem>>, vector<1x64xf32>
    %19 = vector.broadcast %18 : vector<1x64xf32> to vector<16x64xf32>
    %20 = arith.addf %17, %19 : vector<16x64xf32>
    %cst_20 = arith.constant dense<0xFF800000> : vector<16xf32>
    %21 = vector.multi_reduction <maximumf>, %20, %cst_20 [1] : vector<16x64xf32> to vector<16xf32>
    %22 = vector.shape_cast %21 : vector<16xf32> to vector<16x1xf32>
    %23 = vector.broadcast %22 : vector<16x1xf32> to vector<16x64xf32>
    %24 = arith.subf %20, %23 : vector<16x64xf32>
    %25 = math.exp %24 : vector<16x64xf32>
    %c0_21 = arith.constant 0 : index
    %c0_22 = arith.constant 0 : index
    %26 = vector.load %arg2[%c0_21, %c0_22] : memref<64x64xf32, #tpu.memory_space<vmem>>, vector<64x64xf32>
    %cst_23 = arith.constant dense<0.000000e+00> : vector<16x64xf32>
    %27 = tpu.matmul %25, %26, %cst_23 {dimension_numbers = #tpu.dot_dimension_numbers<[1], [0], [0], [1], [0, 0, 1, 1], [], []>} : vector<16x64xf32>, vector<64x64xf32>, vector<16x64xf32> -> vector<16x64xf32>
    %28 = arith.divf %25, %27 : vector<16x64xf32>
    %c0_24 = arith.constant 0 : index
    %c0_25 = arith.constant 0 : index
    %29 = vector.load %arg3[%c0_24, %c0_25] : memref<64x32xf32, #tpu.memory_space<vmem>>, vector<64x32xf32>
    %cst_26 = arith.constant dense<0.000000e+00> : vector<16x32xf32>
    %30 = tpu.matmul %28, %29, %cst_26 {dimension_numbers = #tpu.dot_dimension_numbers<[1], [0], [0], [1], [0, 0, 1, 1], [], []>} : vector<16x64xf32>, vector<64x32xf32>, vector<16x32xf32> -> vector<16x32xf32>
    %31 = vector.broadcast %2 : vector<1x32xf32> to vector<16x32xf32>
    %32 = arith.addf %30, %31 : vector<16x32xf32>
    %c0_27 = arith.constant 0 : index
    %c0_28 = arith.constant 0 : index
    %c0_29 = arith.constant 0 : index
    %33 = vector.load %arg4[%c0_27, %c0_28, %c0_29] : memref<3x32x32xf32, #tpu.memory_space<vmem>>, vector<1x32x32xf32>
    %34 = vector.shape_cast %33 : vector<1x32x32xf32> to vector<32x32xf32>
    %cst_30 = arith.constant dense<0.000000e+00> : vector<16x32xf32>
    %35 = tpu.matmul %0, %34, %cst_30 {dimension_numbers = #tpu.dot_dimension_numbers<[1], [0], [0], [1], [0, 0, 1, 1], [], []>} : vector<16x32xf32>, vector<32x32xf32>, vector<16x32xf32> -> vector<16x32xf32>
    %c1_31 = arith.constant 1 : index
    %c0_32 = arith.constant 0 : index
    %c0_33 = arith.constant 0 : index
    %36 = vector.load %arg4[%c1_31, %c0_32, %c0_33] : memref<3x32x32xf32, #tpu.memory_space<vmem>>, vector<1x32x32xf32>
    %37 = vector.shape_cast %36 : vector<1x32x32xf32> to vector<32x32xf32>
    %cst_34 = arith.constant dense<0.000000e+00> : vector<16x32xf32>
    %38 = tpu.matmul %32, %37, %cst_34 {dimension_numbers = #tpu.dot_dimension_numbers<[1], [0], [0], [1], [0, 0, 1, 1], [], []>} : vector<16x32xf32>, vector<32x32xf32>, vector<16x32xf32> -> vector<16x32xf32>
    %39 = arith.addf %35, %38 : vector<16x32xf32>
    %40 = vector.broadcast %4 : vector<1x32xf32> to vector<16x32xf32>
    %41 = arith.addf %39, %40 : vector<16x32xf32>
    %cst_35 = arith.constant 0.000000e+00 : f32
    %42 = vector.broadcast %cst_35 : f32 to vector<16x32xf32>
    %43 = arith.maximumf %41, %42 : vector<16x32xf32>
    %44 = vector.broadcast %12 : vector<1x32xf32> to vector<16x32xf32>
    %45 = arith.mulf %43, %44 : vector<16x32xf32>
    %cst_36 = arith.constant dense<0.000000e+00> : vector<16xf32>
    %46 = vector.multi_reduction <add>, %45, %cst_36 [1] : vector<16x32xf32> to vector<16xf32>
    %47 = vector.shape_cast %46 : vector<16xf32> to vector<16x1xf32>
    %48 = vector.broadcast %15 : vector<1x1xf32> to vector<16x1xf32>
    %49 = arith.addf %47, %48 : vector<16x1xf32>
    %50 = arith.negf %49 : vector<16x1xf32>
    %51 = math.exp %50 : vector<16x1xf32>
    %cst_37 = arith.constant 1.000000e+00 : f32
    %52 = vector.broadcast %cst_37 : f32 to vector<16x1xf32>
    %53 = arith.addf %52, %51 : vector<16x1xf32>
    %54 = arith.divf %52, %53 : vector<16x1xf32>
    %55 = vector.broadcast %54 : vector<16x1xf32> to vector<16x32xf32>
    %56 = arith.mulf %55, %32 : vector<16x32xf32>
    %57 = arith.addf %0, %56 : vector<16x32xf32>
    %c2_38 = arith.constant 2 : index
    %c0_39 = arith.constant 0 : index
    %c0_40 = arith.constant 0 : index
    %58 = vector.load %arg4[%c2_38, %c0_39, %c0_40] : memref<3x32x32xf32, #tpu.memory_space<vmem>>, vector<1x32x32xf32>
    %59 = vector.shape_cast %58 : vector<1x32x32xf32> to vector<32x32xf32>
    %cst_41 = arith.constant dense<0.000000e+00> : vector<16x32xf32>
    %60 = tpu.matmul %57, %59, %cst_41 {dimension_numbers = #tpu.dot_dimension_numbers<[1], [0], [0], [1], [0, 0, 1, 1], [], []>} : vector<16x32xf32>, vector<32x32xf32>, vector<16x32xf32> -> vector<16x32xf32>
    %61 = vector.broadcast %6 : vector<1x32xf32> to vector<16x32xf32>
    %62 = arith.addf %60, %61 : vector<16x32xf32>
    %cst_42 = arith.constant dense<0.000000e+00> : vector<16xf32>
    %63 = vector.multi_reduction <add>, %62, %cst_42 [1] : vector<16x32xf32> to vector<16xf32>
    %64 = vector.shape_cast %63 : vector<16xf32> to vector<16x1xf32>
    %cst_43 = arith.constant 3.200000e+01 : f32
    %65 = vector.broadcast %cst_43 : f32 to vector<16x1xf32>
    %66 = arith.divf %64, %65 : vector<16x1xf32>
    %67 = arith.mulf %62, %62 : vector<16x32xf32>
    %cst_44 = arith.constant dense<0.000000e+00> : vector<16xf32>
    %68 = vector.multi_reduction <add>, %67, %cst_44 [1] : vector<16x32xf32> to vector<16xf32>
    %69 = vector.shape_cast %68 : vector<16xf32> to vector<16x1xf32>
    %cst_45 = arith.constant 3.200000e+01 : f32
    %70 = vector.broadcast %cst_45 : f32 to vector<16x1xf32>
    %71 = arith.divf %69, %70 : vector<16x1xf32>
    %72 = arith.mulf %66, %66 : vector<16x1xf32>
    %73 = arith.subf %71, %72 : vector<16x1xf32>
    %74 = vector.broadcast %66 : vector<16x1xf32> to vector<16x32xf32>
    %75 = arith.subf %62, %74 : vector<16x32xf32>
    %cst_46 = arith.constant 9.99999974E-6 : f32
    %76 = vector.broadcast %cst_46 : f32 to vector<16x1xf32>
    %77 = arith.addf %73, %76 : vector<16x1xf32>
    %78 = math.rsqrt %77 : vector<16x1xf32>
    %79 = vector.broadcast %78 : vector<16x1xf32> to vector<16x32xf32>
    %80 = arith.mulf %75, %79 : vector<16x32xf32>
    %81 = vector.broadcast %8 : vector<1x32xf32> to vector<16x32xf32>
    %82 = arith.mulf %80, %81 : vector<16x32xf32>
    %83 = vector.broadcast %10 : vector<1x32xf32> to vector<16x32xf32>
    %84 = arith.addf %82, %83 : vector<16x32xf32>
    %c0_47 = arith.constant 0 : index
    %c0_48 = arith.constant 0 : index
    %85 = vector.load %arg7[%c0_47, %c0_48] : memref<16x32xf32, #tpu.memory_space<vmem>>, vector<16x32xf32>
    tpu.vector_store %arg7[%c0_47, %c0_48], %84 {strides = array<i32>} : memref<16x32xf32, #tpu.memory_space<vmem>>, vector<16x32xf32>,
    return
  }
}

</mosaic_0001>

<bundles_post_ra>
// kernel: knowledge_integration.1
= control target key start
LH: loop header
LB: loop body
LE: loop exit
PB: predicated region body
PF: predicated region fallthrough
CT: control target
= control target key end

     0   :  { %12 = vsyncpa [#allocation3], 0  ;;  %s1320_s0 = inlined_call_operand.vmem [shape: f32[16,32], index: 0, kind: input, shape index: {}]   ;;  %s1321_s1 = inlined_call_operand.hbm [shape: f32[32,64], index: 1, kind: input, shape index: {}]   ;;  %s1322_s2 = inlined_call_operand.hbm [shape: f32[64,64], index: 2, kind: input, shape index: {}]   ;;  %s1323_s3 = inlined_call_operand.vmem [shape: f32[64,32], index: 3, kind: input, shape index: {}]   ;;  %s1324_s4 = inlined_call_operand.vmem [shape: f32[3,32,32], index: 4, kind: input, shape index: {}]   ;;  %s1325_s5 = inlined_call_operand.vmem [shape: f32[1,64], index: 5, kind: input, shape index: {}]   ;;  %s1326_s6 = inlined_call_operand.hbm [shape: f32[7,1,32], index: 6, kind: input, shape index: {}]   ;;  %s1327_s7 = inlined_call_operand.hbm [shape: f32[16,32], index: 7, kind: output, shape index: {}]  }
   0x1   :  { %13 = vsyncpa [#allocation6], 0 }
   0x2   :  { %14 = vsyncpa [#allocation4], 0  ;;  %s1106_s24 = smov [#allocation5]   ;;  %s1107_s26 = smov [#allocation2]  }
   0x3   :  { %s34_s25 = sshll.u32 %s1106_s24, 4  ;;  %s22_s27 = sshll.u32 %s1107_s26, 4  ;;  %s35_s25 = int_to_ptr.vmem [resolvable:$true] %s34_s25  ;;  %s1155_s27 = int_to_ptr.vmem [resolvable:$true] %s22_s27 }
   0x4   :  { %s1012_s30 = scalar_lea.hbm %s1322_s2, 1024 }
   0x5   :  { %p1013_p0 = scmp.ne.s32.totalorder %s1322_s2, %s1012_s30  ;;  %p1016_p1 = scmp.lt.u32.totalorder %s1012_s30, %s1322_s2 }
   0x7   :  { %p1018_p2 = pnand %p1016_p1, %p1013_p0 }
   0x9   :  { %1021 = shalt.err (!%p1018_p2)
}
   0xa   :  { %s1022_s12 = scalar_lea.vmem %s35_s25, 1024  ;;  %p1027_p4 = scmp.lt.s32.totalorder %s35_s25, %s35_s25 }
   0xb   :  { %p1023_p3 = scmp.ne.s32.totalorder %s35_s25, %s1022_s12  ;;  %p1028_p5 = scmp.lt.s32.totalorder %s1022_s12, %s1022_s12 }
   0xd   :  { %p1029_p6 = por %p1028_p5, %p1027_p4 }
   0xf   :  { %p1030_p7 = pnand %p1029_p6, %p1023_p3 }
  0x11   :  { %1033 = shalt.err (!%p1030_p7)
}
  0x12   :  { %s1108_s13 = smov 128   ;;  %s1109_s14 = smov 8  }
  0x13   :  { %40 = dma.hbm_to_vmem [thread:$0]  %s1322_s2, 1024, %s35_s25, [#allocation6], %s1108_s13, %s1108_s13, %s1109_s14  }
  0x14   :  { %s1034_s19 = scalar_lea.hbm %s1321_s1, 512 }
  0x15   :  { %p1035_p8 = scmp.ne.s32.totalorder %s1321_s1, %s1034_s19  ;;  %p1038_p9 = scmp.lt.u32.totalorder %s1034_s19, %s1321_s1 }
  0x17   :  { %p1040_p10 = pnand %p1038_p9, %p1035_p8 }
  0x19   :  { %1043 = shalt.err (!%p1040_p10)
}
  0x1a   :  { %s1044_s24 = scalar_lea.vmem %s1155_s27, 512  ;;  %p1049_p12 = scmp.lt.s32.totalorder %s1155_s27, %s1155_s27 }
  0x1b   :  { %p1045_p11 = scmp.ne.s32.totalorder %s1155_s27, %s1044_s24  ;;  %p1050_p13 = scmp.lt.s32.totalorder %s1044_s24, %s1044_s24 }
  0x1d   :  { %p1051_p0 = por %p1050_p13, %p1049_p12 }
  0x1f   :  { %p1052_p1 = pnand %p1051_p0, %p1045_p11 }
  0x21   :  { %1055 = shalt.err (!%p1052_p1)
}
  0x22   :  { %28 = dma.hbm_to_vmem [thread:$0]  %s1321_s1, 512, %s1155_s27, [#allocation3], %s1108_s13, %s1108_s13, %s1109_s14  }
  0x23   :  { %s1110_s26 = smov [#allocation7]   ;;  %s1056_s8 = scalar_lea.hbm %s1326_s6, 112 }
  0x24   :  { %s52_s28 = sshll.u32 %s1110_s26, 4  ;;  %p1057_p2 = scmp.ne.s32.totalorder %s1326_s6, %s1056_s8  ;;  %s53_s28 = int_to_ptr.vmem [resolvable:$true] %s52_s28 }
  0x25   :  { %p1060_p3 = scmp.lt.u32.totalorder %s1056_s8, %s1326_s6 }
  0x27   :  { %p1062_p4 = pnand %p1060_p3, %p1057_p2 }
  0x29   :  { %1065 = shalt.err (!%p1062_p4)
}
  0x2a   :  { %s1066_s15 = scalar_lea.vmem %s53_s28, 112  ;;  %s1070_s1 = scalar_lea.vmem %s53_s28, 128 }
  0x2b   :  { %p1067_p5 = scmp.ne.s32.totalorder %s53_s28, %s1066_s15  ;;  %p1071_p6 = scmp.lt.s32.totalorder %s53_s28, %s53_s28 }
  0x2c   :  { %p1072_p7 = scmp.lt.s32.totalorder %s1070_s1, %s1066_s15 }
  0x2e   :  { %p1073_p8 = por %p1072_p7, %p1071_p6 }
  0x30   :  { %p1074_p9 = pnand %p1073_p8, %p1067_p5 }
  0x32   :  { %1077 = shalt.err (!%p1074_p9)
}
  0x33   :  { %s1111_s27 = smov 16   ;;  %s1112_s16 = smov 1  }
  0x34   :  { %58 = dma.hbm_to_vmem [thread:$0]  %s1326_s6, 112, %s53_s28, [#allocation6], %s1111_s27, %s1111_s27, %s1112_s16  }
  0x35   :  { %1100 = dma.done.wait [#allocation3], 512  }
  0x36   :  { %1101 = vsyncadd [#allocation3], 4294966784 }
  0x37   :  { %1102 = dma.done.wait [#allocation6], 1136  }
  0x38   :  { %1103 = vsyncadd [#allocation6], 4294966160  ;;  %vm94_vm0 = vcmask 261120   ;;  %v83_v0 = vld [vmem:[#allocation2] sm:$0xff]  ;;  %v84_v1 = vld [vmem:[#allocation2 + $0x8] sm:$0xff]  ;;  %vm176_vm1 = vcmask 523264  }
  0x39   :  { %v85_v2 = vld [vmem:[#allocation2 + $0x10] sm:$0xff]  ;;  %v915_v3 = vpack.c.bf16 %v84_v1, %v83_v0  ;;  %v86_v4 = vld [vmem:[#allocation2 + $0x18] sm:$0xff]  ;;  %v1207_v5 = vld [vmem:[%s1320_s0] sm:$0xff] }
  0x3a   :  { %v919_v6 = vpack.c.bf16 %v86_v4, %v85_v2  ;;  %841 = vmatprep.mubr.msk.f32.mxu0 %vm94_vm0, %v1207_v5  ;;  %v1214_v7 = vld [vmem:[%s1320_s0 + $0x8] sm:$0xff]  ;;  %v759_v8 = vld [vmem:[%s1325_s5] ss:$0 sm:$0xff]  ;;  %v191_v18 = vld [vmem:[#allocation5 + $0x10] sm:$0xff] }
  0x3b   :  { %916 = vmatprep.subr.bf16.mxu0 %v915_v3  ;;  %v189_v15 = vld [vmem:[#allocation5] sm:$0xff]  ;;  %v190_v16 = vld [vmem:[#allocation5 + $0x8] sm:$0xff]  ;;  %v192_v19 = vld [vmem:[#allocation5 + $0x18] sm:$0xff] }
  0x3c   :  { %918 = vmatpush3.bf16.msra.mxu0 %v915_v3  ;;  %v923_v17 = vpack.c.bf16 %v190_v16, %v189_v15  ;;  %v927_v20 = vpack.c.bf16 %v192_v19, %v191_v18  ;;  %v193_v21 = vld [vmem:[#allocation5 + $0x20] sm:$0xff]  ;;  %v194_v22 = vld [vmem:[#allocation5 + $0x28] sm:$0xff]  ;;  %v195_v23 = vld [vmem:[#allocation5 + $0x30] sm:$0xff] }
  0x3d   :  { %920 = vmatprep.subr.bf16.mxu0 %v919_v6  ;;  %v931_v24 = vpack.c.bf16 %v194_v22, %v193_v21  ;;  %v196_v25 = vld [vmem:[#allocation5 + $0x38] sm:$0xff]  ;;  %v282_v35 = vld [vmem:[%s1323_s3] sm:$0xff]  ;;  %v283_v36 = vld [vmem:[%s1323_s3 + $0x8] sm:$0xff] }
  0x3e   :  { %924 = vmatprep.subr.bf16.mxu1 %v923_v17  ;;  %v935_v26 = vpack.c.bf16 %v196_v25, %v195_v23  ;;  %v939_v37 = vpack.c.bf16 %v283_v36, %v282_v35  ;;  %v284_v38 = vld [vmem:[%s1323_s3 + $0x10] sm:$0xff]  ;;  %v285_v39 = vld [vmem:[%s1323_s3 + $0x18] sm:$0xff]  ;;  %v286_v41 = vld [vmem:[%s1323_s3 + $0x20] sm:$0xff] }
  0x3f   :  { %926 = vmatpush3.bf16.msra.mxu1 %v923_v17  ;;  %v943_v40 = vpack.c.bf16 %v285_v39, %v284_v38  ;;  %v287_v42 = vld [vmem:[%s1323_s3 + $0x28] sm:$0xff]  ;;  %v288_v44 = vld [vmem:[%s1323_s3 + $0x30] sm:$0xff]  ;;  %v289_v45 = vld [vmem:[%s1323_s3 + $0x38] sm:$0xff] }
  0x40   :  { %922 = vmatpush3.bf16.msra.mxu0 %v919_v6  ;;  %928 = vmatprep.subr.bf16.mxu1 %v927_v20  ;;  %v947_v43 = vpack.c.bf16 %v287_v42, %v286_v41  ;;  %v951_v46 = vpack.c.bf16 %v289_v45, %v288_v44  ;;  %v767_v47 = vld [vmem:[%s1324_s4 + $0x20] sm:$0xff]  ;;  %v768_v48 = vld [vmem:[%s1324_s4 + $0x28] sm:$0xff]  ;;  %v769_v56 = vld [vmem:[%s1324_s4 + $0x30] sm:$0xff] }
  0x41   :  { %940 = vmatprep.subr.bf16.mxu0 %v939_v37  ;;  %v955_v49 = vpack.c.bf16 %v768_v48, %v767_v47  ;;  %v770_v57 = vld [vmem:[%s1324_s4 + $0x38] sm:$0xff]  ;;  %v377_v59 = vld [vmem:[%s1324_s4] sm:$0xff]  ;;  %v378_v60 = vld [vmem:[%s1324_s4 + $0x8] sm:$0xff] }
  0x42   :  { %v959_v58 = vpack.c.bf16 %v770_v57, %v769_v56  ;;  %v963_v61 = vpack.c.bf16 %v378_v60, %v377_v59  ;;  %v764_v62 = vld [vmem:[#allocation7] ss:$0 sm:$0xff]  ;;  %v379_v0 = vld [vmem:[%s1324_s4 + $0x10] sm:$0xff]  ;;  %v380_v1 = vld [vmem:[%s1324_s4 + $0x18] sm:$0xff] }
  0x43   :  { %842 = vmatmul.mubr.msk.f32.vlgmr.msra.gmra.mrb[0].mxu0 %vm94_vm0, %v1214_v7  ;;  %930 = vmatpush3.bf16.msra.mxu1 %v927_v20  ;;  %v967_v6 = vpack.c.bf16 %v380_v1, %v379_v0  ;;  %v1113_v20 = vmov 0   ;;  %v777_v21 = vld [vmem:[#allocation7 + $0x6] ss:$0 sm:$0xff]  ;;  %v782_v36 = vld [vmem:[%s1324_s4 + $0x50] sm:$0xff] }
  0x44   :  { %932 = vmatprep.subr.bf16.mxu1 %v931_v24  ;;  %942 = vmatpush3.bf16.msra.mxu0 %v939_v37  ;;  %v783_v37 = vld [vmem:[%s1324_s4 + $0x58] sm:$0xff] }
  0x45   :  { %944 = vmatprep.subr.bf16.mxu0 %v943_v40  ;;  %990 = vset.pattern.permute.xlu0 %v1113_v20  ;;  %v975_v38 = vpack.c.bf16 %v783_v37, %v782_v36 }
  0x46   :  { %991 = vset.pattern.permute.xlu1 %v1113_v20 }
  0x47   :  { %934 = vmatpush3.bf16.msra.mxu1 %v931_v24 }
  0x48   :  { %936 = vmatprep.subr.bf16.mxu1 %v935_v26  ;;  %946 = vmatpush3.bf16.msra.mxu0 %v943_v40 }
  0x49   :  { %948 = vmatprep.subr.bf16.mxu0 %v947_v43 }
  0x4b   :  { %938 = vmatpush3.bf16.msra.mxu1 %v935_v26 }
  0x4c   :  { %950 = vmatpush3.bf16.msra.mxu0 %v947_v43  ;;  %956 = vmatprep.subr.bf16.mxu1 %v955_v49 }
  0x4d   :  { %952 = vmatprep.subr.bf16.mxu0 %v951_v46 }
  0x50   :  { %954 = vmatpush3.bf16.msra.mxu0 %v951_v46  ;;  %v784_v46 = vld [vmem:[#allocation7 + $0x2] ss:$0 sm:$0xff] }
 0x116   :  { %v843_v9 = vpop.f32.mrb[0].mxu0 }
 0x117   :  { %v167_v10 = vpop.f32.mrb[1].mxu0  ;;  %v173_v12 = vadd.f32 %v843_v9, %v759_v8 }
 0x118   :  { %v168_v11 = vadd.f32 %v759_v8, %v167_v10  ;;  %v775_v8 = vld [vmem:[#allocation7 + $0x1] ss:$0 sm:$0xff] }
 0x119   :  { %v180_v14 = vsel %vm176_vm1, %v173_v12, -inf }
 0x11a   :  { %v177_v13 = vsel %vm176_vm1, %v168_v11, -inf }
 0x11b   :  { %178 = vmax.xlane.f32.xlu0 %v177_v13  ;;  %v776_v13 = vld [vmem:[#allocation7 + $0x5] ss:$0 sm:$0xff] }
 0x11f   :  { %181 = vmax.xlane.f32.xlu0 %v180_v14 }
 0x1a8   :  { %v179_v27 = vpop.xlane.xlu0 %178 }
 0x1a9   :  { %v183_v28 = vsub.f32 %v168_v11, %v179_v27 }
 0x1ab   :  { %v185_v29 = vmul.f32 1.442695, %v183_v28 }
 0x1ac   :  { %v182_v30 = vpop.xlane.xlu0 %181 }
 0x1ad   :  { %992 = vpow2.f32 %v185_v29  ;;  %v184_v31 = vsub.f32 %v173_v12, %v182_v30 }
 0x1af   :  { %v187_v32 = vmul.f32 1.442695, %v184_v31 }
 0x1b1   :  { %994 = vpow2.f32 %v187_v32  ;;  %v780_v32 = vld [vmem:[%s1324_s4 + $0x40] sm:$0xff] }
 0x1b7   :  { %v993_v33 = vpop.eup %992 }
 0x1b8   :  { %860 = vmatprep.mubr.msk.f32.mxu1 %vm176_vm1, %v993_v33 }
 0x1bb   :  { %v995_v34 = vpop.eup %994 }
 0x1bc   :  { %861 = vmatmul.mubr.msk.f32.vlgmr.msra.gmra.mrb[0].mxu1 %vm176_vm1, %v995_v34 }
 0x1bd   :  { %958 = vmatpush3.bf16.msra.mxu1 %v955_v49 }
 0x1be   :  { %960 = vmatprep.subr.bf16.mxu1 %v959_v58 }
 0x1c1   :  { %962 = vmatpush3.bf16.msra.mxu1 %v959_v58 }
 0x1c2   :  { %964 = vmatprep.subr.bf16.mxu1 %v963_v61 }
 0x28f   :  { %v862_v50 = vpop.f32.mrb[0].mxu1 }
 0x290   :  { %996 = vrcp.f32 %v862_v50  ;;  %v269_v51 = vpop.f32.mrb[1].mxu1 }
 0x291   :  { %998 = vrcp.f32 %v269_v51 }
 0x29a   :  { %v997_v52 = vpop.eup %996 }
 0x29b   :  { %v999_v53 = vpop.eup %998  ;;  %v281_v55 = vmul.f32 %v997_v52, %v995_v34 }
 0x29c   :  { %v279_v54 = vmul.f32 %v999_v53, %v993_v33  ;;  %v781_v33 = vld [vmem:[%s1324_s4 + $0x48] sm:$0xff]  ;;  %s1114_s4 = smov [#allocation8]  }
 0x29d   :  { %v971_v34 = vpack.c.bf16 %v781_v33, %v780_v32  ;;  %s746_s12 = sshll.u32 %s1114_s4, 4  ;;  %s747_s12 = int_to_ptr.vmem [resolvable:$true] %s746_s12 }
 0x29e   :  { %879 = vmatprep.mubr.msk.f32.mxu0 %vm176_vm1, %v279_v54  ;;  %s1078_s15 = scalar_lea.vmem %s747_s12, 256  ;;  %p1083_p11 = scmp.lt.s32.totalorder %s747_s12, %s747_s12 }
 0x29f   :  { %880 = vmatmul.mubr.msk.f32.vlgmr.msra.gmra.mrb[2].mxu0 %vm176_vm1, %v281_v55  ;;  %972 = vmatprep.subr.bf16.mxu0 %v971_v34  ;;  %p1079_p10 = scmp.ne.s32.totalorder %s747_s12, %s1078_s15  ;;  %p1084_p12 = scmp.lt.s32.totalorder %s1078_s15, %s1078_s15 }
 0x2a0   :  { %974 = vmatpush3.bf16.msra.mxu0 %v971_v34 }
 0x2a1   :  { %976 = vmatprep.subr.bf16.mxu0 %v975_v38  ;;  %p1085_p13 = por %p1084_p12, %p1083_p11 }
 0x2a3   :  { %p1086_p0 = pnand %p1085_p13, %p1079_p10 }
 0x2a4   :  { %978 = vmatpush3.bf16.msra.mxu0 %v975_v38 }
 0x372   :  { %v881_v63 = vpop.f32.mrb[2].mxu0 }
 0x373   :  { %v368_v2 = vpop.f32.mrb[3].mxu0  ;;  %v374_v4 = vadd.f32 %v881_v63, %v764_v62 }
 0x374   :  { %v369_v3 = vadd.f32 %v764_v62, %v368_v2 }
 0x376   :  { %890 = vmatprep.mubr.msk.f32.mxu1 %vm94_vm0, %v369_v3 }
 0x377   :  { %891 = vmatmul.mubr.msk.f32.vlgmr.msra.gmra.mrb[2].mxu1 %vm94_vm0, %v374_v4 }
 0x378   :  { %966 = vmatpush3.bf16.msra.mxu1 %v963_v61  ;;  %901 = vmatprep.mubr.msk.f32.mxu1 %vm94_vm0, %v1207_v5 }
 0x379   :  { %968 = vmatprep.subr.bf16.mxu1 %v967_v6 }
 0x37c   :  { %970 = vmatpush3.bf16.msra.mxu1 %v967_v6 }
 0x37f   :  { %902 = vmatmul.mubr.msk.f32.vlgmr.msra.gmra.mrb[2].mxu1 %vm94_vm0, %v1214_v7 }
 0x452   :  { %v903_v9 = vpop.f32.mrb[2].mxu1 }
 0x453   :  { %v549_v10 = vadd.f32 %v903_v9, %v775_v8  ;;  %v533_v11 = vpop.f32.mrb[3].mxu1  ;;  %v787_v9 = vld [vmem:[#allocation7 + $0x3] ss:$0 sm:$0xff] }
 0x454   :  { %v548_v12 = vadd.f32 %v775_v8, %v533_v11  ;;  %v788_v11 = vld [vmem:[#allocation7 + $0x4] ss:$0 sm:$0xff] }
 0x455   :  { %v551_v14 = vmax.f32 %v549_v10, 0.0 }
 0x456   :  { %v550_v15 = vmax.f32 %v548_v12, 0.0 }
 0x457   :  { %v559_v18 = vmul.f32 %v776_v13, %v551_v14 }
 0x458   :  { %v558_v16 = vmul.f32 %v776_v13, %v550_v15 }
 0x459   :  { %v563_v19 = vsel %vm94_vm0, %v559_v18, 0.0 }
 0x45a   :  { %v560_v17 = vsel %vm94_vm0, %v558_v16, 0.0 }
 0x45b   :  { %561 = vadd.xlane.f32.xlu1 %v560_v17 }
 0x45f   :  { %564 = vadd.xlane.f32.xlu1 %v563_v19 }
 0x4e8   :  { %v562_v22 = vpop.xlane.xlu1 %561 }
 0x4e9   :  { %v572_v23 = vadd.f32 %v777_v21, %v562_v22 }
 0x4eb   :  { %v778_v24 = vmul.f32 -1.442695, %v572_v23 }
 0x4ec   :  { %v565_v25 = vpop.xlane.xlu1 %564 }
 0x4ed   :  { %1000 = vpow2.f32 %v778_v24  ;;  %v573_v26 = vadd.f32 %v777_v21, %v565_v25 }
 0x4ef   :  { %v779_v27 = vmul.f32 -1.442695, %v573_v26 }
 0x4f1   :  { %1002 = vpow2.f32 %v779_v27 }
 0x4f7   :  { %v1001_v28 = vpop.eup %1000 }
 0x4f8   :  { %v580_v29 = vadd.f32 1.0, %v1001_v28 }
 0x4fa   :  { %1004 = vrcp.f32 %v580_v29 }
 0x4fb   :  { %v1003_v30 = vpop.eup %1002 }
 0x4fc   :  { %v581_v31 = vadd.f32 1.0, %v1003_v30 }
 0x4fe   :  { %1006 = vrcp.f32 %v581_v31 }
 0x504   :  { %v1005_v35 = vpop.eup %1004 }
 0x505   :  { %588 = vperm.xlu0 %990, %v1005_v35  }
 0x508   :  { %v1007_v39 = vpop.eup %1006 }
 0x509   :  { %593 = vperm.xlu1 %991, %v1007_v39  }
 0x584   :  { %v589_v40 = vpop.permute.xlu0 %588 }
 0x585   :  { %v596_v41 = vmul.f32 %v589_v40, %v369_v3 }
 0x587   :  { %v598_v42 = vadd.f32 %v596_v41, %v1207_v5 }
 0x588   :  { %v594_v43 = vpop.permute.xlu1 %593 }
 0x589   :  { %v597_v44 = vmul.f32 %v594_v43, %v374_v4  ;;  %912 = vmatprep.mubr.msk.f32.mxu0 %vm94_vm0, %v598_v42 }
 0x58b   :  { %v599_v45 = vadd.f32 %v597_v44, %v1214_v7 }
 0x58d   :  { %913 = vmatmul.mubr.msk.f32.vlgmr.msra.gmra.mrb[4].mxu0 %vm94_vm0, %v599_v45 }
 0x660   :  { %v914_v47 = vpop.f32.mrb[4].mxu0 }
 0x661   :  { %v689_v48 = vadd.f32 %v914_v47, %v784_v46  ;;  %v683_v49 = vpop.f32.mrb[5].mxu0 }
 0x662   :  { %v684_v50 = vadd.f32 %v784_v46, %v683_v49 }
 0x663   :  { %v695_v51 = vsel %vm94_vm0, %v689_v48, 0.0  ;;  %v702_v54 = vmul.f32 %v689_v48, %v689_v48 }
 0x664   :  { %696 = vadd.xlane.f32.xlu0 %v695_v51  ;;  %v692_v52 = vsel %vm94_vm0, %v684_v50, 0.0  ;;  %v701_v53 = vmul.f32 %v684_v50, %v684_v50 }
 0x665   :  { %693 = vadd.xlane.f32.xlu1 %v692_v52  ;;  %v706_v7 = vsel %vm94_vm0, %v702_v54, 0.0 }
 0x666   :  { %v703_v5 = vsel %vm94_vm0, %v701_v53, 0.0 }
 0x669   :  { %704 = vadd.xlane.f32.xlu1 %v703_v5 }
 0x66d   :  { %707 = vadd.xlane.f32.xlu1 %v706_v7 }
 0x6f1   :  { %v697_v57 = vpop.xlane.xlu0 %696 }
 0x6f2   :  { %v694_v55 = vpop.xlane.xlu1 %693  ;;  %v700_v59 = vmul.f32 0.03125, %v697_v57 }
 0x6f3   :  { %v699_v56 = vmul.f32 0.03125, %v694_v55 }
 0x6f4   :  { %v712_v0 = vmul.f32 %v700_v59, %v700_v59  ;;  %v716_v12 = vsub.f32 %v689_v48, %v700_v59 }
 0x6f5   :  { %v711_v60 = vmul.f32 %v699_v56, %v699_v56  ;;  %v715_v6 = vsub.f32 %v684_v50, %v699_v56 }
 0x6f6   :  { %v705_v58 = vpop.xlane.xlu1 %704 }
 0x6f7   :  { %v709_v61 = vmul.f32 0.03125, %v705_v58 }
 0x6f9   :  { %v713_v62 = vsub.f32 %v709_v61, %v711_v60 }
 0x6fa   :  { %v708_v63 = vpop.xlane.xlu1 %707 }
 0x6fb   :  { %v717_v1 = vadd.f32 1e-05, %v713_v62  ;;  %v710_v2 = vmul.f32 0.03125, %v708_v63 }
 0x6fd   :  { %1008 = vrsqrt.f32 %v717_v1  ;;  %v714_v3 = vsub.f32 %v710_v2, %v712_v0 }
 0x6ff   :  { %v718_v4 = vadd.f32 1e-05, %v714_v3 }
 0x701   :  { %1010 = vrsqrt.f32 %v718_v4 }
 0x707   :  { %v1009_v8 = vpop.eup %1008 }
 0x708   :  { %v721_v10 = vmul.f32 %v1009_v8, %v715_v6 }
 0x70a   :  { %v729_v13 = vmul.f32 %v787_v9, %v721_v10 }
 0x70b   :  { %v1011_v14 = vpop.eup %1010 }
 0x70c   :  { %v722_v15 = vmul.f32 %v1011_v14, %v716_v12  ;;  %v737_v16 = vadd.f32 %v788_v11, %v729_v13 }
 0x70e   :  { %v730_v17 = vmul.f32 %v787_v9, %v722_v15  ;;  %739 = vst.msk [vmem:[#allocation8] sm:$0xff] %vm94_vm0, %v737_v16 }
 0x710   :  { %v738_v18 = vadd.f32 %v788_v11, %v730_v17 }
 0x712   :  { %740 = vst.msk [vmem:[#allocation8 + $0x8] sm:$0xff] %vm94_vm0, %v738_v18 }
 0x713   :  { %1089 = shalt.err (!%p1086_p0)
}
 0x714   :  { %s1090_s16 = scalar_lea.hbm %s1327_s7, 256 }
 0x715   :  { %p1091_p1 = scmp.ne.s32.totalorder %s1327_s7, %s1090_s16  ;;  %p1094_p2 = scmp.lt.u32.totalorder %s1090_s16, %s1327_s7 }
 0x717   :  { %p1096_p3 = pnand %p1094_p2, %p1091_p1 }
 0x719   :  { %1099 = shalt.err (!%p1096_p3)
}
 0x71a   :  { %752 = dma.vmem_to_hbm [thread:$0]  %s747_s12, 256, %s1327_s7, [#allocation4], %s1108_s13, %s1108_s13, %s1109_s14  }
 0x71b   :  { %1104 = dma.done.wait [#allocation4], 256  }
 0x71c   :  { %1105 = vsyncadd [#allocation4], 4294967040 }
 0x71d   :  { %756 = vsyncpa [#allocation3], 1 }
 0x71e   :  { %757 = vsyncpa [#allocation6], 1 }
 0x71f   :  { %758 = vsyncpa [#allocation4], 1 }

</bundles_post_ra>
